<compile_context>
chip_gen: v5e
topology: v5e:2x2
jax: 0.10.0
libtpu: 0.0.40
codegen_flags: <defaults>
</compile_context>

<pallas_src>
import functools

import jax
import jax.numpy as jnp
from jax.experimental import pallas as pl
from jax.experimental.pallas import tpu as pltpu

_LANES = 128            # minimum lane width
_WIDE_LANES = 1024      # preferred lane-dense slab width
_SUBLANES = 8           # f32 sublane granularity
_TARGET_TILE_BYTES = 1 << 20   # ~1 MiB per block buffer (3 operands x 2 bufs = 6 MiB)


def _ceil_to(a, m):
    return -(-a // m) * m


def _signed_threshold(keep_prob):
    """int32 threshold t such that P(uniform_int32 < t) == keep_prob."""
    t = int(round(keep_prob * 4294967296.0)) - 2147483648
    return max(-2147483648, min(t, 2147483647))


def _dropout_kernel(x_ref, bits_ref, o_ref, *, threshold, scale):
    """keep = (bits < threshold); out = keep ? x / keep_prob : 0."""
    x = x_ref[...]
    keep = bits_ref[...] < jnp.int32(threshold)
    o_ref[...] = jnp.where(keep, x * jnp.asarray(scale, x.dtype), jnp.zeros_like(x))


def _apply_dropout_slab(x_flat, bits_flat, threshold, scale):
    """Run the dropout kernel over a flattened array + matching int32 bits."""
    n = x_flat.shape[0]
    itemsize = x_flat.dtype.itemsize

    # Lane-dense slab: wide lanes when there is enough data, else the 128 minimum.
    c = _WIDE_LANES if n >= _SUBLANES * _WIDE_LANES else _LANES
    rows = _ceil_to(-(-n // c), _SUBLANES)                       # multiple of 8

    # ~1 MiB per block buffer, rows-per-tile a multiple of 8 sublanes.
    tile_r = max(_SUBLANES,
                 (_TARGET_TILE_BYTES // (c * itemsize)) // _SUBLANES * _SUBLANES)
    tile_r = min(rows, tile_r)
    rows = _ceil_to(rows, tile_r)                                # grid divides evenly

    pad = rows * c - n
    x2 = jnp.pad(x_flat, (0, pad)).reshape(rows, c)
    b2 = jnp.pad(bits_flat, (0, pad)).reshape(rows, c)

    kernel = functools.partial(_dropout_kernel, threshold=threshold, scale=scale)
    out2 = pl.pallas_call(
        kernel,
        out_shape=jax.ShapeDtypeStruct((rows, c), x_flat.dtype),
        grid=(rows // tile_r,),
        in_specs=[
            pl.BlockSpec((tile_r, c), lambda i: (i, 0)),
            pl.BlockSpec((tile_r, c), lambda i: (i, 0)),
        ],
        out_specs=pl.BlockSpec((tile_r, c), lambda i: (i, 0)),
        compiler_params=pltpu.CompilerParams(
            dimension_semantics=("parallel",),           # split rows across TCs (v7x)
            vmem_limit_bytes=32 * 1024 * 1024,           # safe on v5e/v6e/v7x
        ),
    )(x2, b2)
    return out2.reshape(-1)[:n]


def sv_dropout(s, v, *, drop_rate, key, training=True):
    """SVDropout.forward: (s, v) -> (Dropout(s), VectorDropout(v))."""
    if (not training) or drop_rate == 0.0:
        return s, v
    keep_prob = 1.0 - drop_rate
    threshold = _signed_threshold(keep_prob)
    scale = 1.0 / keep_prob
    ks, kv = jax.random.split(key)

    # --- scalar channel: element-wise dropout (nn.Dropout) -------------------
    s_flat = s.reshape(-1)
    bits_s = jax.lax.bitcast_convert_type(
        jax.random.bits(ks, s_flat.shape, dtype=jnp.uint32), jnp.int32)
    s_out = _apply_dropout_slab(s_flat, bits_s, threshold, scale).reshape(s.shape)

    # --- vector channel: one decision per vector, broadcast over vec_dim -----
    vec = v.shape[-1]
    n_vec = v.size // vec
    bits_vec = jax.lax.bitcast_convert_type(
        jax.random.bits(kv, (n_vec,), dtype=jnp.uint32), jnp.int32)
    bits_v = jnp.broadcast_to(bits_vec[:, None], (n_vec, vec)).reshape(-1)
    v_out = _apply_dropout_slab(v.reshape(-1), bits_v, threshold, scale).reshape(v.shape)
    return s_out, v_out


if __name__ == "__main__":
    drop_rate = 0.25
    keep_prob = 1.0 - drop_rate

    key = jax.random.PRNGKey(0)
    kx, ky, kd = jax.random.split(key, 3)
    # ScalarVector: s is (batch, nodes, d_s); v is (batch, nodes, n_v, 3)
    s = jax.random.normal(kx, (2, 16, 32), dtype=jnp.float32)
    v = jax.random.normal(ky, (2, 16, 8, 3), dtype=jnp.float32)

    s_out, v_out = sv_dropout(s, v, drop_rate=drop_rate, key=kd, training=True)
    s_out = jax.block_until_ready(s_out)
    v_out = jax.block_until_ready(v_out)

    # --- sanity checks of the dropout semantics ------------------------------
    # Surviving elements are exactly x / keep_prob, dropped elements are 0.
    # (Inputs are continuous normals, so exact zeros in the input have
    #  probability ~0; the !=0 mask inference is safe here.)
    s_keep = (s_out != 0.0).astype(jnp.float32)
    assert jnp.allclose(s_out, s * (1.0 / keep_prob) * s_keep, atol=1e-5)
    assert 0 < int(s_keep.sum()) < s_keep.size  # some kept, some dropped

    v_keep = (v_out != 0.0)
    # Vector dropout: within each vector (last dim) elements are all kept or all dropped.
    assert bool(jnp.all(jnp.all(v_keep, axis=-1) == jnp.any(v_keep, axis=-1)))
    v_keep_f = v_keep.astype(jnp.float32)
    assert jnp.allclose(v_out, v * (1.0 / keep_prob) * v_keep_f, atol=1e-5)

    # Eval mode is a passthrough.
    s_eval, v_eval = sv_dropout(s, v, drop_rate=drop_rate, key=kd, training=False)
    assert jnp.array_equal(s_eval, s) and jnp.array_equal(v_eval, v)

    print("KERNEL_OK")
</pallas_src>

<mosaic_0001>
module attributes {stable_mosaic.version = 11 : i64} {
  func.func @_dropout_kernel(%arg0: i32, %arg1: memref<8x128xf32, #tpu.memory_space<vmem>>, %arg2: memref<8x128xi32, #tpu.memory_space<vmem>>, %arg3: memref<8x128xf32, #tpu.memory_space<vmem>>) attributes {dimension_semantics = [#tpu.dimension_semantics<parallel>], iteration_bounds = array<i64: 1>, scalar_prefetch = 0 : i64, scratch_operands = 0 : i64, tpu.core_type = #tpu.core_type<tc>, window_params = [{transform_indices = @transform_0, window_bounds = array<i64: 8, 128>}, {transform_indices = @transform_1, window_bounds = array<i64: 8, 128>}, {transform_indices = @transform_2, window_bounds = array<i64: 8, 128>}]} {
    %c0 = arith.constant 0 : index
    %c0_0 = arith.constant 0 : index
    %0 = vector.load %arg1[%c0, %c0_0] : memref<8x128xf32, #tpu.memory_space<vmem>>, vector<8x128xf32>
    %c0_1 = arith.constant 0 : index
    %c0_2 = arith.constant 0 : index
    %1 = vector.load %arg2[%c0_1, %c0_2] : memref<8x128xi32, #tpu.memory_space<vmem>>, vector<8x128xi32>
    %c1073741824_i32 = arith.constant 1073741824 : i32
    %2 = vector.broadcast %c1073741824_i32 : i32 to vector<8x128xi32>
    %3 = arith.cmpi slt, %1, %2 : vector<8x128xi32>
    %cst = arith.constant 1.33333337 : f32
    %4 = vector.broadcast %cst : f32 to vector<8x128xf32>
    %5 = arith.mulf %0, %4 : vector<8x128xf32>
    %cst_3 = arith.constant 0.000000e+00 : f32
    %6 = vector.broadcast %cst_3 : f32 to vector<8x128xf32>
    %7 = arith.select %3, %5, %6 : vector<8x128xi1>, vector<8x128xf32>
    %c0_4 = arith.constant 0 : index
    %c0_5 = arith.constant 0 : index
    %8 = vector.load %arg3[%c0_4, %c0_5] : memref<8x128xf32, #tpu.memory_space<vmem>>, vector<8x128xf32>
    tpu.vector_store %arg3[%c0_4, %c0_5], %7 {strides = array<i32>} : memref<8x128xf32, #tpu.memory_space<vmem>>, vector<8x128xf32>,
    return
  }
  func.func @transform_0(%arg0: i32) -> (i32, i32) {
    %c0_i32 = arith.constant 0 : i32
    %c0_i32_0 = arith.constant 0 : i32
    return %arg0, %c0_i32 : i32, i32
  }
  func.func @transform_1(%arg0: i32) -> (i32, i32) {
    %c0_i32 = arith.constant 0 : i32
    %c0_i32_0 = arith.constant 0 : i32
    return %arg0, %c0_i32 : i32, i32
  }
  func.func @transform_2(%arg0: i32) -> (i32, i32) {
    %c0_i32 = arith.constant 0 : i32
    %c0_i32_0 = arith.constant 0 : i32
    return %arg0, %c0_i32 : i32, i32
  }
}

</mosaic_0001>

<bundles_post_ra>
// kernel: tpu_custom_call.1
= control target key start
LH: loop header
LB: loop body
LE: loop exit
PB: predicated region body
PF: predicated region fallthrough
CT: control target
= control target key end

     0   :  { %7 = vsyncpa [#allocation3], 0  ;;  %s172_s0 = inlined_call_operand.hbm [shape: f32[8,128], index: 0, kind: input, shape index: {}]   ;;  %s173_s1 = inlined_call_operand.hbm [shape: s32[8,128], index: 1, kind: input, shape index: {}]   ;;  %s174_s2 = inlined_call_operand.hbm [shape: f32[8,128], index: 2, kind: output, shape index: {}]  }
   0x1   :  { %8 = vsyncpa [#allocation6], 0 }
   0x2   :  { %9 = vsyncpa [#allocation4], 0  ;;  %s15_s11 = sshll.u32 %s172_s0, 4  ;;  %s145_s12 = smov [#allocation2]   ;;  %s16_s11 = int_to_ptr.hbm [resolvable:$true] %s15_s11 }
   0x3   :  { %s17_s13 = sshll.u32 %s145_s12, 4  ;;  %s26_s16 = sshll.u32 %s173_s1, 4  ;;  %s18_s13 = int_to_ptr.vmem [resolvable:$true] %s17_s13  ;;  %s27_s16 = int_to_ptr.hbm [resolvable:$true] %s26_s16 }
   0x4   :  { %20 = dma.hbm_to_vmem [thread:$0]  %s16_s11, 128, %s18_s13, [#allocation3]  }
   0x5   :  { %s146_s17 = smov [#allocation5]  }
   0x6   :  { %s28_s18 = sshll.u32 %s146_s17, 4  ;;  %s29_s18 = int_to_ptr.vmem [resolvable:$true] %s28_s18 }
   0x7   :  { %31 = dma.hbm_to_vmem [thread:$0]  %s27_s16, 128, %s29_s18, [#allocation6]  }
   0x8   :  { %139 = dma.done.wait [#allocation3], 128  }
   0x9   :  { %140 = vsyncadd [#allocation3], 4294967168 }
   0xa   :  { %141 = dma.done.wait [#allocation6], 128  }
   0xb   :  { %142 = vsyncadd [#allocation6], 4294967168  ;;  %s147_s19 = smov [#allocation7]   ;;  %s53_s22 = sshll.u32 %s174_s2, 4  ;;  %v40_v0 = vld [vmem:[#allocation2] sm:$0xff]  ;;  %v41_v1 = vld [vmem:[#allocation5] sm:$0xff]  ;;  %s54_s22 = int_to_ptr.hbm [resolvable:$true] %s53_s22 }
   0xc   :  { %s51_s0 = sshll.u32 %s147_s19, 4  ;;  %vm42_vm0 = vcmp.lt.s32.totalorder %v41_v1, 1073741824  ;;  %v43_v2 = vmul.f32 1.3333334, %v40_v0  ;;  %s52_s0 = int_to_ptr.vmem [resolvable:$true] %s51_s0 }
   0xe   :  { %v44_v3 = vsel %vm42_vm0, %v43_v2, 0.0 }
   0xf   :  { %45 = vst [vmem:[#allocation7] sm:$0xff] %v44_v3 }
  0x10   :  { %56 = dma.vmem_to_hbm [thread:$0]  %s52_s0, 128, %s54_s22, [#allocation4]  }
  0x11   :  { %143 = dma.done.wait [#allocation4], 128  }
  0x12   :  { %144 = vsyncadd [#allocation4], 4294967168 }
  0x13   :  { %61 = vsyncpa [#allocation3], 1 }
  0x14   :  { %62 = vsyncpa [#allocation6], 1 }
  0x15   :  { %63 = vsyncpa [#allocation4], 1 }

</bundles_post_ra>
